<compile_context>
chip_gen: v6e
topology: v6e:2x2x1
jax: 0.10.0
libtpu: 0.0.40
codegen_flags: <defaults>
</compile_context>

<pallas_src>
import functools

import jax
import jax.numpy as jnp
from jax.experimental import pallas as pl
from jax.experimental.pallas import tpu as pltpu


# --------------------------------------------------------------------------- #
# Kernel bodies
# --------------------------------------------------------------------------- #
def _activation_product(out, gate, approx_act):
    """SiLU(out) * Sigmoid(gate) = out * sigma(out) * sigma(gate)."""
    if approx_act:
        # Fuse both sigmoids into a single EUP reciprocal:
        #   sigma(a)*sigma(b) = 1 / ((1+exp(-a)) * (1+exp(-b)))
        denom = (1.0 + jnp.exp(-out)) * (1.0 + jnp.exp(-gate))
        return out * pl.reciprocal(denom, approx=True)
    return out * jax.nn.sigmoid(out) * jax.nn.sigmoid(gate)


def _glu_kernel_single_k(x_ref, w_ref, b_ref, out_ref, *, approx_act):
    """K fits in one block: no accumulator scratch, fused dot -> epilogue -> store."""
    tn = out_ref.shape[1]
    y = jnp.dot(x_ref[...], w_ref[...], preferred_element_type=jnp.float32)
    out = y[:, :tn] + b_ref[:, :tn]        # output-branch pre-activation (bm, tn)
    gate = y[:, tn:] + b_ref[:, tn:]       # gateway-branch pre-activation (bm, tn)
    out_ref[...] = _activation_product(out, gate, approx_act).astype(out_ref.dtype)


def _glu_kernel_k_acc(x_ref, w_ref, b_ref, out_ref, acc_ref, *, approx_act):
    """K is tiled: f32 VMEM accumulator, init at k==0, epilogue at k==last."""
    k = pl.program_id(2)

    @pl.when(k == 0)
    def _():
        acc_ref[...] = jnp.zeros_like(acc_ref)

    # Single fused MXU matmul: (bm, bk) @ (bk, 2*tn) -> (bm, 2*tn), f32 accumulate.
    acc_ref[...] += jnp.dot(x_ref[...], w_ref[...],
                            preferred_element_type=jnp.float32)

    @pl.when(k == pl.num_programs(2) - 1)
    def _():
        tn = out_ref.shape[1]
        out = acc_ref[:, :tn] + b_ref[:, :tn]     # sliced loads, no full-width temp
        gate = acc_ref[:, tn:] + b_ref[:, tn:]
        out_ref[...] = _activation_product(out, gate, approx_act).astype(out_ref.dtype)


# --------------------------------------------------------------------------- #
# Tiling helpers
# --------------------------------------------------------------------------- #
def _pick_tile(dim, candidates):
    for c in candidates:
        if c <= dim and dim % c == 0:
            return c
    return dim


def _select_tn(out_dim, block_n=None):
    tn = block_n or _pick_tile(out_dim, (256, 128))
    # Lane-dense output tiles: tn must be a multiple of 128 unless it spans the
    # full dim, otherwise the [:, :tn] split crosses a lane tile (masked vst.msk).
    assert tn % 128 == 0 or tn == out_dim, (tn, out_dim)
    assert out_dim % tn == 0, (out_dim, tn)
    return tn


def _vmem_budget_bytes():
    """Physical VMEM of this generation minus ~25% headroom."""
    cap = 64 * 1024 * 1024   # conservative fallback (v7x-sized)
    try:
        info = pltpu.get_tpu_info()
        cap = int(getattr(info, "vmem_capacity_bytes", cap))
    except Exception:
        pass
    return cap * 3 // 4      # v7x 64MiB -> 48MiB; v5e/v6e 128MiB -> 96MiB


def _select_m_k_tiles(B, in_dim, out_dim, tn, block_batch, block_k,
                      x_bytes, w_bytes, out_bytes, vmem_budget, weight_buffers):
    # Prefer the biggest m tile that divides B -> fewer weight re-fetches across m.
    bm = block_batch or _pick_tile(B, (2048, 1024, 512, 256, 128, 64, 32, 16, 8))
    if block_k is not None:
        bk = block_k
    else:
        bk = in_dim if in_dim <= 2048 else _pick_tile(in_dim, (2048, 1024, 512, 256))

    # v7x megacore: guarantee >=2 "parallel" grid tiles so both TensorCores get
    # work (costs one extra grid step on 1-TC chips, negligible).
    if (block_batch is None and (B // bm) * (out_dim // tn) == 1
            and bm % 16 == 0):
        bm //= 2

    def est(bm_, bk_):
        n_k = in_dim // bk_
        acc = bm_ * 2 * tn * 4 if n_k > 1 else 0
        return (2 * bm_ * bk_ * x_bytes                       # x double-buffer
                + weight_buffers * bk_ * 2 * tn * w_bytes     # fused weight buffers
                + 2 * 2 * tn * 4                              # fused bias
                + 2 * bm_ * tn * out_bytes                    # output double-buffer
                + acc)                                        # f32 accumulator

    # Shrink bm (then bk) until the working set fits the per-generation budget.
    if block_batch is None:
        while est(bm, bk) > vmem_budget and bm % 16 == 0:
            bm //= 2
    if block_k is None:
        while est(bm, bk) > vmem_budget and bk > 256 and bk % 2 == 0:
            bk //= 2

    assert B % bm == 0, (B, bm)
    assert in_dim % bk == 0, (in_dim, bk)
    return bm, bk, est(bm, bk)


# --------------------------------------------------------------------------- #
# Parameter preparation (done ONCE, outside the per-call path)
# --------------------------------------------------------------------------- #
def glu_prepare_params(w_gate, b_gate, w_out, b_out, *,
                       block_n=None, param_dtype=jnp.bfloat16):
    """Pack the two Linear layers into one fused [out | gate] weight/bias pair.

    w_gate, w_out: [in_dim, out_dim]  (already transposed from torch's [out, in])
    b_gate, b_out: [out_dim]
    Returns (w_cat [in_dim, 2*out_dim], b_cat [1, 2*out_dim] f32, tn).
    Per N-tile of width tn, columns are laid out as [out_tile | gate_tile] so the
    kernel does a single MXU push of width 2*tn per grid step.
    """
    in_dim, out_dim = w_gate.shape
    tn = _select_tn(out_dim, block_n)
    n_n = out_dim // tn
    w_cat = jnp.concatenate(
        [w_out.reshape(in_dim, n_n, tn), w_gate.reshape(in_dim, n_n, tn)],
        axis=2).reshape(in_dim, 2 * out_dim).astype(param_dtype)
    b_cat = jnp.concatenate(
        [b_out.reshape(n_n, tn), b_gate.reshape(n_n, tn)],
        axis=1).reshape(1, 2 * out_dim).astype(jnp.float32)
    return w_cat, b_cat, tn


# --------------------------------------------------------------------------- #
# Forward pass
# --------------------------------------------------------------------------- #
def gated_linear_unit(x, w_cat, b_cat, block_n, *,
                      block_batch=None, block_k=None,
                      compute_dtype=jnp.bfloat16, approx_act=False,
                      weight_buffers=2):
    """SiLU(x @ W_out + b_out) * Sigmoid(x @ W_gate + b_gate), fused params.

    x:     [B, in_dim]
    w_cat: [in_dim, 2*out_dim]   pre-fused by glu_prepare_params (its dtype is
                                 the weight compute dtype; not cast per call)
    b_cat: [1, 2*out_dim] f32
    block_n: tn returned by glu_prepare_params (packing granularity).
    """
    B, in_dim = x.shape
    out_dim = w_cat.shape[1] // 2
    tn = block_n
    assert out_dim % tn == 0 and (tn % 128 == 0 or tn == out_dim), (out_dim, tn)
    out_dtype = x.dtype

    if compute_dtype is not None and x.dtype != compute_dtype:
        x = x.astype(compute_dtype)

    x_bytes = x.dtype.itemsize
    w_bytes = w_cat.dtype.itemsize
    out_bytes = jnp.dtype(out_dtype).itemsize

    vmem_budget = _vmem_budget_bytes()
    bm, bk, vmem_est = _select_m_k_tiles(
        B, in_dim, out_dim, tn, block_batch, block_k,
        x_bytes, w_bytes, out_bytes, vmem_budget, weight_buffers)

    n_m, n_n, n_k = B // bm, out_dim // tn, in_dim // bk
    vmem_limit = int(min(vmem_budget, max(32 * 1024 * 1024, 2 * vmem_est)))

    cost = pl.CostEstimate(
        flops=4 * B * in_dim * out_dim,
        transcendentals=2 * B * out_dim,
        bytes_accessed=(x.size * x_bytes + w_cat.size * w_bytes
                        + b_cat.size * 4 + B * out_dim * out_bytes),
    )

    wspec_kw = ({"pipeline_mode": pl.Buffered(weight_buffers)}
                if weight_buffers != 2 else {})

    if n_k == 1:
        # Common path: whole K fits in one block -> no accumulator scratch.
        kernel = functools.partial(_glu_kernel_single_k, approx_act=approx_act)
        grid = (n_m, n_n)
        in_specs = [
            pl.BlockSpec((bm, bk), lambda i, j: (i, 0)),             # x tile
            pl.BlockSpec((bk, 2 * tn), lambda i, j: (0, j), **wspec_kw),  # fused W
            pl.BlockSpec((1, 2 * tn), lambda i, j: (0, j)),          # fused bias
        ]
        out_specs = pl.BlockSpec((bm, tn), lambda i, j: (i, j))
        scratch = []
        dims = ("parallel", "parallel")
    else:
        kernel = functools.partial(_glu_kernel_k_acc, approx_act=approx_act)
        grid = (n_m, n_n, n_k)
        in_specs = [
            pl.BlockSpec((bm, bk), lambda i, j, k: (i, k)),
            pl.BlockSpec((bk, 2 * tn), lambda i, j, k: (k, j), **wspec_kw),
            pl.BlockSpec((1, 2 * tn), lambda i, j, k: (0, j)),
        ]
        out_specs = pl.BlockSpec((bm, tn), lambda i, j, k: (i, j))
        scratch = [pltpu.VMEM((bm, 2 * tn), jnp.float32)]
        dims = ("parallel", "parallel", "arbitrary")

    return pl.pallas_call(
        kernel,
        out_shape=jax.ShapeDtypeStruct((B, out_dim), out_dtype),
        grid_spec=pltpu.PrefetchScalarGridSpec(
            num_scalar_prefetch=0,
            grid=grid,
            in_specs=in_specs,
            out_specs=out_specs,
            scratch_shapes=scratch,
        ),
        compiler_params=pltpu.CompilerParams(
            dimension_semantics=dims,
            vmem_limit_bytes=vmem_limit,
        ),
        cost_estimate=cost,
    )(x, w_cat, b_cat)


def xavier_uniform(key, in_dim, out_dim, dtype=jnp.float32):
    # Matches torch.nn.init.xavier_uniform_ on a (out_dim, in_dim) Linear weight,
    # returned already transposed to (in_dim, out_dim).
    bound = (6.0 / (in_dim + out_dim)) ** 0.5
    return jax.random.uniform(key, (in_dim, out_dim), dtype,
                              minval=-bound, maxval=bound)


if __name__ == "__main__":
    in_dim, out_dim, batch = 128, 128, 64   # small but lane-aligned demo shapes

    key = jax.random.PRNGKey(0)
    kx, kg, ko = jax.random.split(key, 3)

    x = jax.random.normal(kx, (batch, in_dim), jnp.float32)
    w_gate = xavier_uniform(kg, in_dim, out_dim)
    b_gate = jnp.zeros((out_dim,), jnp.float32)
    w_out = xavier_uniform(ko, in_dim, out_dim)
    b_out = jnp.zeros((out_dim,), jnp.float32)

    # Pure-JAX reference (matches the torch module: SiLU(out) * Sigmoid(gate)).
    ref = jax.nn.silu(x @ w_out + b_out) * jax.nn.sigmoid(x @ w_gate + b_gate)

    # --- f32 params + f32 compute -> exact activations, tight tolerance -------
    w32, bias32, tn32 = glu_prepare_params(w_gate, b_gate, w_out, b_out,
                                           param_dtype=jnp.float32)
    y32 = jax.block_until_ready(
        gated_linear_unit(x, w32, bias32, tn32, compute_dtype=None))
    assert jnp.allclose(y32, ref, atol=1e-5, rtol=1e-5), "f32 mismatch vs reference"

    # --- default path: bf16 params/activations (packed ONCE), f32 accumulate,
    #     fused-reciprocal activations on the EUP -> loose tolerance ------------
    wbf, biasbf, tnbf = glu_prepare_params(w_gate, b_gate, w_out, b_out)  # bf16
    ybf = jax.block_until_ready(
        gated_linear_unit(x, wbf, biasbf, tnbf, approx_act=True))
    assert jnp.allclose(ybf.astype(jnp.float32), ref, atol=3e-2, rtol=3e-2), \
        "bf16 mismatch vs reference"

    print("KERNEL_OK")
</pallas_src>

<mosaic_0001>
module attributes {stable_mosaic.version = 11 : i64} {
  func.func @_glu_kernel_single_k(%arg0: i32, %arg1: i32, %arg2: memref<32x128xf32, #tpu.memory_space<vmem>>, %arg3: memref<128x256xf32, #tpu.memory_space<vmem>>, %arg4: memref<1x256xf32, #tpu.memory_space<vmem>>, %arg5: memref<32x128xf32, #tpu.memory_space<vmem>>) attributes {dimension_semantics = [#tpu.dimension_semantics<parallel>, #tpu.dimension_semantics<parallel>], iteration_bounds = array<i64: 2, 1>, scalar_prefetch = 0 : i64, scratch_operands = 0 : i64, tpu.core_type = #tpu.core_type<tc>, window_params = [{transform_indices = @transform_0, window_bounds = array<i64: 32, 128>}, {transform_indices = @transform_1, window_bounds = array<i64: 128, 256>}, {transform_indices = @transform_2, window_bounds = array<i64: 1, 256>}, {transform_indices = @transform_3, window_bounds = array<i64: 32, 128>}]} {
    %c0 = arith.constant 0 : index
    %c0_0 = arith.constant 0 : index
    %0 = vector.load %arg2[%c0, %c0_0] : memref<32x128xf32, #tpu.memory_space<vmem>>, vector<32x128xf32>
    %c0_1 = arith.constant 0 : index
    %c0_2 = arith.constant 0 : index
    %1 = vector.load %arg3[%c0_1, %c0_2] : memref<128x256xf32, #tpu.memory_space<vmem>>, vector<128x256xf32>
    %cst = arith.constant dense<0.000000e+00> : vector<32x256xf32>
    %2 = tpu.matmul %0, %1, %cst {dimension_numbers = #tpu.dot_dimension_numbers<[1], [0], [0], [1], [0, 0, 1, 1], [], []>} : vector<32x128xf32>, vector<128x256xf32>, vector<32x256xf32> -> vector<32x256xf32>
    %3 = vector.extract_strided_slice %2 {offsets = [0, 0], sizes = [32, 128], strides = [1, 1]} : vector<32x256xf32> to vector<32x128xf32>
    %c0_3 = arith.constant 0 : index
    %c0_4 = arith.constant 0 : index
    %4 = vector.load %arg4[%c0_3, %c0_4] : memref<1x256xf32, #tpu.memory_space<vmem>>, vector<1x128xf32>
    %5 = vector.broadcast %4 : vector<1x128xf32> to vector<32x128xf32>
    %6 = arith.addf %3, %5 : vector<32x128xf32>
    %7 = vector.extract_strided_slice %2 {offsets = [0, 128], sizes = [32, 128], strides = [1, 1]} : vector<32x256xf32> to vector<32x128xf32>
    %c0_5 = arith.constant 0 : index
    %c128 = arith.constant 128 : index
    %8 = vector.load %arg4[%c0_5, %c128] : memref<1x256xf32, #tpu.memory_space<vmem>>, vector<1x128xf32>
    %9 = vector.broadcast %8 : vector<1x128xf32> to vector<32x128xf32>
    %10 = arith.addf %7, %9 : vector<32x128xf32>
    %11 = arith.negf %6 : vector<32x128xf32>
    %12 = math.exp %11 : vector<32x128xf32>
    %cst_6 = arith.constant 1.000000e+00 : f32
    %13 = vector.broadcast %cst_6 : f32 to vector<32x128xf32>
    %14 = arith.addf %13, %12 : vector<32x128xf32>
    %15 = arith.divf %13, %14 : vector<32x128xf32>
    %16 = arith.mulf %6, %15 : vector<32x128xf32>
    %17 = arith.negf %10 : vector<32x128xf32>
    %18 = math.exp %17 : vector<32x128xf32>
    %cst_7 = arith.constant 1.000000e+00 : f32
    %19 = vector.broadcast %cst_7 : f32 to vector<32x128xf32>
    %20 = arith.addf %19, %18 : vector<32x128xf32>
    %21 = arith.divf %19, %20 : vector<32x128xf32>
    %22 = arith.mulf %16, %21 : vector<32x128xf32>
    %c0_8 = arith.constant 0 : index
    %c0_9 = arith.constant 0 : index
    %23 = vector.load %arg5[%c0_8, %c0_9] : memref<32x128xf32, #tpu.memory_space<vmem>>, vector<32x128xf32>
    tpu.vector_store %arg5[%c0_8, %c0_9], %22 {strides = array<i32>} : memref<32x128xf32, #tpu.memory_space<vmem>>, vector<32x128xf32>,
    return
  }
  func.func @transform_0(%arg0: i32, %arg1: i32) -> (i32, i32) {
    %c0_i32 = arith.constant 0 : i32
    %c0_i32_0 = arith.constant 0 : i32
    return %arg0, %c0_i32 : i32, i32
  }
  func.func @transform_1(%arg0: i32, %arg1: i32) -> (i32, i32) {
    %c0_i32 = arith.constant 0 : i32
    %c0_i32_0 = arith.constant 0 : i32
    return %c0_i32, %arg1 : i32, i32
  }
  func.func @transform_2(%arg0: i32, %arg1: i32) -> (i32, i32) {
    %c0_i32 = arith.constant 0 : i32
    %c0_i32_0 = arith.constant 0 : i32
    return %c0_i32, %arg1 : i32, i32
  }
  func.func @transform_3(%arg0: i32, %arg1: i32) -> (i32, i32) {
    %c0_i32 = arith.constant 0 : i32
    return %arg0, %arg1 : i32, i32
  }
}

</mosaic_0001>

<bundles_post_ra>
// kernel: tpu_custom_call.1
= control target key start
LH: loop header
LB: loop body
LE: loop exit
PB: predicated region body
PF: predicated region fallthrough
CT: control target
= control target key end

     0   :  { %8 = vsyncpa [#allocation3], 0  ;;  %s1122_s0 = inlined_call_operand.hbm [shape: f32[64,128], index: 0, kind: input, shape index: {}]   ;;  %s1123_s1 = inlined_call_operand.hbm [shape: f32[128,256], index: 1, kind: input, shape index: {}]   ;;  %s1124_s2 = inlined_call_operand.vmem [shape: f32[1,256], index: 2, kind: input, shape index: {}]   ;;  %s1125_s3 = inlined_call_operand.hbm [shape: f32[64,128], index: 3, kind: output, shape index: {}]  }
   0x1   :  { %10 = vsyncpa [#allocation3 + $0x1], 0 }
   0x2   :  { %11 = vsyncpa [#allocation6], 0 }
   0x3   :  { %12 = vsyncpa [#allocation4], 0 }
   0x4   :  { %14 = vsyncpa [#allocation4 + $0x1], 0  ;;  %s921_s12 = smov 0   ;;  %s923_s13 = smov 0  }
   0x5   :  { %s925_s14 = smov 0   ;;  %s927_s15 = smov 0  }
   0x6   :  { %s929_s16 = smov 0   ;;  %s931_s17 = smov 0  }
   0x7 LB: > { %s577_s18 = sadd.s32 4294967295, %s889_s17   ;;  %s578_s19 = sadd.s32 4294967294, %s889_s17   ;;  %s889_s17 = sphi %s931_s17, %s20_s17   ;;  %s885_s16 = sphi %s929_s16, %s1143_s16   ;;  %s881_s15 = sphi %s927_s15, %s1142_s15   ;;  %s877_s14 = sphi %s925_s14, %s1141_s14   ;;  %s873_s13 = sphi %s923_s13, %s1140_s13   ;;  %s869_s12 = sphi %s921_s12, %s1139_s12  }
   0x8   : > { %p52_p0 = scmp.ne.s32.totalorder %s873_s13, %s869_s12  ;;  %p955_p1 = scmp.eq.s32.totalorder %s577_s18, 0 }
   0x9   : > { %p959_p2 = scmp.eq.s32.totalorder %s577_s18, 1  ;;  %p136_p3 = scmp.eq.s32.totalorder %s578_s19, 1 }
   0xa   : > { %p965_p4 = por %p955_p1, %p52_p0  ;;  %p579_p5 = scmp.ge.s32.totalorder %s889_s17, 1 }
   0xb   : > { %p970_p6 = por %p136_p3, %p52_p0  ;;  %p143_p7 = scmp.lt.s32.totalorder %s889_s17, 3 }
   0xc   : > { %s1129_s22 = scalar_select %p965_p4, 1, 0 }
   0xd   : > { %s1130_s23 = scalar_select %p970_p6, 1, 0 }
   0xe   : > { %p975_p8 = pnand %p579_p5, %p143_p7  ;;  %s891_s25 = smov [#allocation5]  }
   0xf   : > { %s158_s26 = sshll.u32 %s891_s25, 4  ;;  %s32_s28 = sadd.s32 1, %s885_s16  ;;  %s159_s26 = int_to_ptr.vmem [resolvable:$true] %s158_s26 }
  0x10   : > { %p647_p9 = pneg %p975_p8  ;;  %s762_s29 = scalar_lea.vmem %s159_s26, 4096 }
  0x11   : > { %p763_p13 = scmp.ne.s32.totalorder %s159_s26, %s762_s29  ;;  %p770_p5 = scmp.lt.s32.totalorder %s159_s26, %s159_s26 }
  0x12   : > { %p984_p11 = pnand %p647_p9, %p955_p1  ;;  %p771_p7 = scmp.lt.s32.totalorder %s762_s29, %s762_s29 }
  0x14   : > { %p753_p12 = pneg %p984_p11  ;;  %p772_p6 = por %p771_p7, %p770_p5 }
  0x16   : > { %p765_p0 = pnand %p763_p13, %p753_p12 }
  0x18   : > { %p766_p3 = pneg %p765_p0 }
  0x1a   : > { %p773_p4 = pnand %p772_p6, %p766_p3 }
  0x1c   : > { %776 = shalt.err (!%p773_p4)
}
  0x1d   : > { %s892_s30 = smov 256   ;;  %s893_s4 = smov 16  }
  0x1e   : > { %650 = dma.hbm_to_vmem [thread:$0]  (!%p984_p11), %s1123_s1, 4096, %s159_s26, [#allocation6], %s892_s30, %s892_s30, %s893_s4  }
  0x1f   : > { %p34_p6 = scmp.ge.s32.totalorder %s32_s28, 2  ;;  %s39_s7 = sadd.s32 1, %s877_s14 }
  0x20   : > { %p46_p4 = scmp.ne.s32.totalorder %s877_s14, %s873_s13  ;;  %p47_p9 = scmp.eq.s32.totalorder %s889_s17, 0 }
  0x21   : > { %s1145_s28 = smov (%p34_p6, %s32_s28), 0  ;;  %p660_p0 = scmp.lt.s32.totalorder %s889_s17, 2 }
  0x22   : > { %p1002_p12 = por %p47_p9, %p46_p4  ;;  %p1008_p13 = por %p959_p2, %p46_p4 }
  0x23   : > { %s36_s10 = ssub.s32 %s885_s16, %s1145_s28  ;;  %s180_s11 = sand.u32 1, %s877_s14  }
  0x24   : > { %p37_p11 = scmp.eq.s32.totalorder %s36_s10, 0  ;;  %s583_s18 = sshll.u32 %s180_s11, 5 }
  0x25   : > { %s605_s25 = sshll.u32 %s885_s16, 9  ;;  %s184_s30 = scalar_lea.vmem [#allocation2], %s583_s18 }
  0x26   : > { %s1017_s19 = scalar_select %p37_p11, %s877_s14, %s39_s7  }
  0x27   : > { %s190_s29 = scalar_lea.hbm %s1122_s0, %s605_s25  ;;  %s191_s4 = sshll.u32 %s184_s30, 4  ;;  %s192_s4 = int_to_ptr.vmem [resolvable:$true] %s191_s4 }
  0x28   : > { %p1025_p2 = pnand %p660_p0, %p1002_p12  ;;  %s181_s5 = scalar_lea.sflag [#allocation3], %s180_s11 }
  0x29   : > { %s790_s6 = scalar_lea.vmem %s192_s4, 512  ;;  %s894_s7 = smov [#allocation2]  }
  0x2a   : > { %p779_p3 = pneg %p1025_p2  ;;  %p791_p5 = scmp.ne.s32.totalorder %s192_s4, %s790_s6 }
  0x2b   : > { %s795_s10 = sshll.u32 %s894_s7, 4  ;;  %s796_s10 = int_to_ptr.vmem [resolvable:$false] %s795_s10 }
  0x2c   : > { %p793_p7 = pnand %p791_p5, %p779_p3  ;;  %s797_s25 = scalar_lea.vmem %s796_s10, 1024 }
  0x2d   : > { %p798_p4 = scmp.lt.s32.totalorder %s192_s4, %s796_s10  ;;  %p799_p9 = scmp.lt.s32.totalorder %s797_s25, %s790_s6 }
  0x2e   : > { %p794_p6 = pneg %p793_p7 }
  0x2f   : > { %p800_p11 = por %p799_p9, %p798_p4 }
  0x31   : > { %p801_p10 = pnand %p800_p11, %p794_p6 }
  0x33   : > { %804 = shalt.err (!%p801_p10)
}
  0x34   : > { %s895_s8 = smov 128   ;;  %s896_s18 = smov 8  }
  0x35   : > { %654 = dma.hbm_to_vmem [thread:$0]  (!%p1025_p2), %s190_s29, 512, %s192_s4, %s181_s5, %s895_s8, %s895_s8, %s896_s18  }
  0x36   : > { %203 = sbr.rel (%p975_p8) target bundleno = 346 (0x15a), region = 32  ;;  %s1036_s11 = sand.u32 (!%p975_p8), 1, %s873_s13  }
  0x37   : > { %s587_s26 = sshll.u32 (!%p975_p8), %s1036_s11, 5  ;;  %s206_s27 = scalar_lea.sflag (!%p975_p8), [#allocation3], %s1036_s11 }
  0x38   : > { %s1042_s30 = scalar_lea.vmem (!%p975_p8), [#allocation2], %s587_s26  ;;  %p1136_p10 = scmp.ne.s32.totalorder (!%p975_p8), %s1129_s22, 0 }
  0x3b   : > { %856 = dma.done.wait (%p1136_p10), %s206_s27, 512  }
  0x3c   : > { %858 = vsyncadd (%p1136_p10), %s206_s27, 4294966784 }
  0x3d   : > { %860 = dma.done.wait (%p955_p1), [#allocation6], 4096  }
  0x3e   : > { %862 = vsyncadd (%p955_p1), [#allocation6], 4294963200  ;;  %v897_v0 = vmov 0.0   ;;  %v283_v1 = vld [vmem:[#allocation5 + $0xf8] sm:$0xff]  ;;  %v282_v2 = vld [vmem:[#allocation5 + $0xf0] sm:$0xff]  ;;  %s606_s4 = sshll.u32 %s881_s15, 9 }
  0x3f   : > { %348 = vmatprep.mubr.f32.mxu0 %v897_v0  ;;  %360 = vmatprep.mubr.f32.mxu1 %v897_v0  ;;  %v281_v3 = vld [vmem:[#allocation5 + $0xe8] sm:$0xff]  ;;  %v280_v4 = vld [vmem:[#allocation5 + $0xe0] sm:$0xff]  ;;  %v279_v5 = vld [vmem:[#allocation5 + $0xd8] sm:$0xff]  ;;  %s239_s21 = scalar_lea.vmem [#allocation7], %s587_s26  ;;  %s1072_s10 = scalar_lea.hbm %s1125_s3, %s606_s4 }
  0x40   : > { %284 = vmatprep.subr.mxu0 %v283_v1  ;;  %607 = vmatprep.subr.mxu1 %v283_v1  ;;  %v278_v6 = vld [vmem:[#allocation5 + $0xd0] sm:$0xff]  ;;  %v277_v7 = vld [vmem:[#allocation5 + $0xc8] sm:$0xff]  ;;  %v276_v8 = vld [vmem:[#allocation5 + $0xc0] sm:$0xff]  ;;  %s470_s5 = sshll.u32 %s239_s21, 4  ;;  %s456_s15 = scalar_lea.sflag [#allocation4], %s1036_s11  ;;  %s1074_s5 = int_to_ptr.vmem [resolvable:$true] %s470_s5 }
  0x41   : > { %285 = vmatpush1.msra.mxu0 %v282_v2  ;;  %623 = vmatpush1.msra.mxu1 %v282_v2  ;;  %v275_v9 = vld [vmem:[#allocation5 + $0xb8] sm:$0xff]  ;;  %v274_v10 = vld [vmem:[#allocation5 + $0xb0] sm:$0xff]  ;;  %v273_v11 = vld [vmem:[#allocation5 + $0xa8] sm:$0xff]  ;;  %s805_s25 = scalar_lea.vmem %s1074_s5, 512  ;;  %s898_s8 = smov [#allocation7]  }
  0x42   : > { %286 = vmatprep.subr.mxu0 %v281_v3  ;;  %608 = vmatprep.subr.mxu1 %v281_v3  ;;  %v272_v12 = vld [vmem:[#allocation5 + $0xa0] sm:$0xff]  ;;  %v271_v13 = vld [vmem:[#allocation5 + $0x98] sm:$0xff]  ;;  %v270_v14 = vld [vmem:[#allocation5 + $0x90] sm:$0xff]  ;;  %p806_p1 = scmp.ne.s32.totalorder %s1074_s5, %s805_s25  ;;  %s809_s18 = sshll.u32 %s898_s8, 4  ;;  %s810_s18 = int_to_ptr.vmem [resolvable:$false] %s809_s18 }
  0x43   : > { %287 = vmatpush1.msra.mxu0 %v280_v4  ;;  %624 = vmatpush1.msra.mxu1 %v280_v4  ;;  %v269_v15 = vld [vmem:[#allocation5 + $0x88] sm:$0xff]  ;;  %v268_v16 = vld [vmem:[#allocation5 + $0x80] sm:$0xff]  ;;  %v267_v17 = vld [vmem:[#allocation5 + $0x78] sm:$0xff]  ;;  %s811_s26 = scalar_lea.vmem %s810_s18, 1024  ;;  %p812_p0 = scmp.lt.s32.totalorder %s1074_s5, %s810_s18 }
  0x44   : > { %288 = vmatprep.subr.mxu0 %v279_v5  ;;  %609 = vmatprep.subr.mxu1 %v279_v5  ;;  %v266_v18 = vld [vmem:[#allocation5 + $0x70] sm:$0xff]  ;;  %v265_v19 = vld [vmem:[#allocation5 + $0x68] sm:$0xff]  ;;  %v264_v20 = vld [vmem:[#allocation5 + $0x60] sm:$0xff]  ;;  %p807_p8 = pnand %p806_p1, %p1008_p13  ;;  %p813_p2 = scmp.lt.s32.totalorder %s811_s26, %s805_s25 }
  0x45   : > { %289 = vmatpush1.msra.mxu0 %v278_v6  ;;  %625 = vmatpush1.msra.mxu1 %v278_v6  ;;  %v263_v21 = vld [vmem:[#allocation5 + $0x58] sm:$0xff]  ;;  %v262_v22 = vld [vmem:[#allocation5 + $0x50] sm:$0xff]  ;;  %v261_v23 = vld [vmem:[#allocation5 + $0x48] sm:$0xff] }
  0x46   : > { %290 = vmatprep.subr.mxu0 %v277_v7  ;;  %610 = vmatprep.subr.mxu1 %v277_v7  ;;  %v260_v24 = vld [vmem:[#allocation5 + $0x40] sm:$0xff]  ;;  %v259_v25 = vld [vmem:[#allocation5 + $0x38] sm:$0xff]  ;;  %v258_v26 = vld [vmem:[#allocation5 + $0x30] sm:$0xff]  ;;  %p808_p12 = pneg %p807_p8  ;;  %p814_p3 = por %p813_p2, %p812_p0 }
  0x47   : > { %291 = vmatpush1.msra.mxu0 %v276_v8  ;;  %626 = vmatpush1.msra.mxu1 %v276_v8  ;;  %v257_v27 = vld [vmem:[#allocation5 + $0x28] sm:$0xff]  ;;  %v256_v28 = vld [vmem:[#allocation5 + $0x20] sm:$0xff]  ;;  %v255_v29 = vld [vmem:[#allocation5 + $0x18] sm:$0xff] }
  0x48   : > { %292 = vmatprep.subr.mxu0 %v275_v9  ;;  %611 = vmatprep.subr.mxu1 %v275_v9  ;;  %v254_v30 = vld [vmem:[#allocation5 + $0x10] sm:$0xff]  ;;  %v253_v31 = vld [vmem:[#allocation5 + $0x8] sm:$0xff]  ;;  %v252_v32 = vld [vmem:[#allocation5] sm:$0xff]  ;;  %p815_p5 = pnand %p814_p3, %p808_p12 }
  0x49   : > { %293 = vmatpush1.msra.mxu0 %v274_v10  ;;  %627 = vmatpush1.msra.mxu1 %v274_v10  ;;  %v248_v33 = vld [vmem:[%s1042_s30] sm:$0xff]  ;;  %v250_v34 = vld [vmem:[%s1042_s30 + $0x10] sm:$0xff]  ;;  %v249_v35 = vld [vmem:[%s1042_s30 + $0x8] sm:$0xff] }
  0x4a   : > { %294 = vmatprep.subr.mxu0 %v273_v11  ;;  %612 = vmatprep.subr.mxu1 %v273_v11  ;;  %v251_v36 = vld [vmem:[%s1042_s30 + $0x18] sm:$0xff]  ;;  %v590_v37 = vld [vmem:[%s1124_s2] ss:$0 sm:$0xff]  ;;  %v591_v40 = vld [vmem:[%s1124_s2 + $0x1] ss:$0 sm:$0xff] }
  0x4b   : > { %295 = vmatpush1.msra.mxu0 %v272_v12  ;;  %628 = vmatpush1.msra.mxu1 %v272_v12 }
  0x4c   : > { %296 = vmatprep.subr.mxu0 %v271_v13  ;;  %613 = vmatprep.subr.mxu1 %v271_v13 }
  0x4d   : > { %297 = vmatpush1.msra.mxu0 %v270_v14  ;;  %629 = vmatpush1.msra.mxu1 %v270_v14 }
  0x4e   : > { %298 = vmatprep.subr.mxu0 %v269_v15  ;;  %614 = vmatprep.subr.mxu1 %v269_v15 }
  0x4f   : > { %299 = vmatpush1.msra.mxu0 %v268_v16  ;;  %630 = vmatpush1.msra.mxu1 %v268_v16 }
  0x50   : > { %300 = vmatprep.subr.mxu0 %v267_v17  ;;  %615 = vmatprep.subr.mxu1 %v267_v17 }
  0x51   : > { %301 = vmatpush1.msra.mxu0 %v266_v18  ;;  %631 = vmatpush1.msra.mxu1 %v266_v18 }
  0x52   : > { %302 = vmatprep.subr.mxu0 %v265_v19  ;;  %616 = vmatprep.subr.mxu1 %v265_v19 }
  0x53   : > { %303 = vmatpush1.msra.mxu0 %v264_v20  ;;  %632 = vmatpush1.msra.mxu1 %v264_v20 }
  0x54   : > { %304 = vmatprep.subr.mxu0 %v263_v21  ;;  %617 = vmatprep.subr.mxu1 %v263_v21 }
  0x55   : > { %305 = vmatpush1.msra.mxu0 %v262_v22  ;;  %633 = vmatpush1.msra.mxu1 %v262_v22 }
  0x56   : > { %306 = vmatprep.subr.mxu0 %v261_v23  ;;  %618 = vmatprep.subr.mxu1 %v261_v23 }
  0x57   : > { %307 = vmatpush1.msra.mxu0 %v260_v24  ;;  %634 = vmatpush1.msra.mxu1 %v260_v24 }
  0x58   : > { %308 = vmatprep.subr.mxu0 %v259_v25  ;;  %619 = vmatprep.subr.mxu1 %v259_v25 }
  0x59   : > { %309 = vmatpush1.msra.mxu0 %v258_v26  ;;  %635 = vmatpush1.msra.mxu1 %v258_v26 }
  0x5a   : > { %310 = vmatprep.subr.mxu0 %v257_v27  ;;  %620 = vmatprep.subr.mxu1 %v257_v27 }
  0x5b   : > { %311 = vmatpush1.msra.mxu0 %v256_v28  ;;  %636 = vmatpush1.msra.mxu1 %v256_v28 }
  0x5c   : > { %312 = vmatprep.subr.mxu0 %v255_v29  ;;  %621 = vmatprep.subr.mxu1 %v255_v29 }
  0x5d   : > { %313 = vmatpush1.msra.mxu0 %v254_v30  ;;  %637 = vmatpush1.msra.mxu1 %v254_v30 }
  0x5e   : > { %314 = vmatprep.subr.mxu0 %v253_v31  ;;  %622 = vmatprep.subr.mxu1 %v253_v31 }
  0x5f   : > { %315 = vmatpush1.msra.mxu0 %v252_v32  ;;  %638 = vmatpush1.msra.mxu1 %v252_v32 }
  0x60   : > { %349 = vmatmul.mubr.f32.vlgmr.msra.gmra.mxu0 %v248_v33  ;;  %361 = vmatmul.mubr.f32.vlgmr.msra.gmra.mxu1 %v250_v34 }
  0x61   : > { %354 = vmatprep.mubr.f32.mxu0 %v897_v0  ;;  %366 = vmatprep.mubr.f32.mxu1 %v897_v0 }
  0x64   : > { %355 = vmatmul.mubr.f32.gmra.mxu0 %v249_v35  ;;  %367 = vmatmul.mubr.f32.gmra.mxu1 %v251_v36 }
 0x120   : > { %v350_v38 = vpop.f32.mrf.mxu0  ;;  %v362_v39 = vpop.f32.mrf.mxu1 }
 0x121   : > { %v380_v41 = vadd.f32 %v590_v37, %v350_v38  ;;  %v382_v42 = vadd.f32 %v590_v37, %v362_v39 }
 0x122   : > { %v352_v43 = vpop.f32.mrf.mxu0  ;;  %v364_v44 = vpop.f32.mrf.mxu1 }
 0x123   : > { %v592_v45 = vmul.f32 -1.442695, %v380_v41  ;;  %v594_v46 = vmul.f32 -1.442695, %v382_v42  ;;  %v391_v47 = vadd.f32 %v591_v40, %v352_v43  ;;  %v393_v48 = vadd.f32 %v591_v40, %v364_v44 }
 0x124   : > { %v356_v49 = vpop.f32.mrf.mxu0  ;;  %v368_v50 = vpop.f32.mrf.mxu1 }
 0x125   : > { %719 = vpow2.f32 %v592_v45  ;;  %v596_v51 = vmul.f32 -1.442695, %v391_v47  ;;  %v598_v52 = vmul.f32 -1.442695, %v393_v48  ;;  %v381_v53 = vadd.f32 %v590_v37, %v356_v49 }
 0x126   : > { %721 = vpow2.f32 %v594_v46  ;;  %v383_v54 = vadd.f32 %v590_v37, %v368_v50  ;;  %v358_v55 = vpop.f32.mrf.mxu0  ;;  %v370_v56 = vpop.f32.mrf.mxu1 }
 0x127   : > { %723 = vpow2.f32 %v596_v51  ;;  %v593_v57 = vmul.f32 -1.442695, %v381_v53  ;;  %v392_v58 = vadd.f32 %v591_v40, %v358_v55  ;;  %v394_v59 = vadd.f32 %v591_v40, %v370_v56 }
 0x128   : > { %725 = vpow2.f32 %v598_v52  ;;  %v595_v60 = vmul.f32 -1.442695, %v383_v54 }
 0x129   : > { %727 = vpow2.f32 %v593_v57  ;;  %v597_v61 = vmul.f32 -1.442695, %v392_v58  ;;  %v599_v62 = vmul.f32 -1.442695, %v394_v59 }
 0x12a   : > { %729 = vpow2.f32 %v595_v60 }
 0x12b   : > { %731 = vpow2.f32 %v597_v61 }
 0x12c   : > { %733 = vpow2.f32 %v599_v62 }
 0x132   : > { %v720_v63 = vpop.eup %719 }
 0x133   : > { %v722_v0 = vpop.eup %721  ;;  %v407_v1 = vadd.f32 1.0, %v720_v63 }
 0x134   : > { %v724_v2 = vpop.eup %723  ;;  %v409_v3 = vadd.f32 1.0, %v722_v0 }
 0x135   : > { %v726_v4 = vpop.eup %725  ;;  %735 = vrcp.f32 %v407_v1  ;;  %v435_v5 = vadd.f32 1.0, %v724_v2 }
 0x136   : > { %v728_v6 = vpop.eup %727  ;;  %737 = vrcp.f32 %v409_v3  ;;  %v437_v7 = vadd.f32 1.0, %v726_v4 }
 0x137   : > { %v730_v8 = vpop.eup %729  ;;  %739 = vrcp.f32 %v435_v5  ;;  %v408_v9 = vadd.f32 1.0, %v728_v6 }
 0x138   : > { %v732_v10 = vpop.eup %731  ;;  %741 = vrcp.f32 %v437_v7  ;;  %v410_v11 = vadd.f32 1.0, %v730_v8 }
 0x139   : > { %v734_v12 = vpop.eup %733  ;;  %743 = vrcp.f32 %v408_v9  ;;  %v436_v13 = vadd.f32 1.0, %v732_v10 }
 0x13a   : > { %745 = vrcp.f32 %v410_v11  ;;  %v438_v14 = vadd.f32 1.0, %v734_v12 }
 0x13b   : > { %747 = vrcp.f32 %v436_v13 }
 0x13c   : > { %749 = vrcp.f32 %v438_v14 }
 0x142   : > { %v736_v15 = vpop.eup %735 }
 0x143   : > { %v738_v16 = vpop.eup %737  ;;  %v419_v17 = vmul.f32 %v736_v15, %v380_v41 }
 0x144   : > { %v740_v18 = vpop.eup %739  ;;  %v421_v19 = vmul.f32 %v738_v16, %v382_v42 }
 0x145   : > { %v742_v20 = vpop.eup %741  ;;  %v447_v21 = vmul.f32 %v740_v18, %v419_v17 }
 0x146   : > { %v744_v22 = vpop.eup %743  ;;  %v449_v23 = vmul.f32 %v742_v20, %v421_v19 }
 0x147   : > { %v746_v24 = vpop.eup %745  ;;  %451 = vst [vmem:[%s239_s21] sm:$0xff] %v447_v21  ;;  %v420_v25 = vmul.f32 %v744_v22, %v381_v53 }
 0x148   : > { %v748_v26 = vpop.eup %747  ;;  %453 = vst [vmem:[%s239_s21 + $0x10] sm:$0xff] %v449_v23  ;;  %v422_v27 = vmul.f32 %v746_v24, %v383_v54 }
 0x149   : > { %v750_v28 = vpop.eup %749  ;;  %v448_v29 = vmul.f32 %v748_v26, %v420_v25 }
 0x14a   : > { %v450_v30 = vmul.f32 %v750_v28, %v422_v27 }
 0x14b   : > { %452 = vst [vmem:[%s239_s21 + $0x8] sm:$0xff] %v448_v29 }
 0x14c   : > { %454 = vst [vmem:[%s239_s21 + $0x18] sm:$0xff] %v450_v30 }
 0x14d   : > { %818 = shalt.err (!%p815_p5)
}
 0x14e   : > { %s819_s27 = scalar_lea.hbm %s1072_s10, 512  ;;  %s823_s22 = scalar_lea.hbm %s1125_s3, 1024 }
 0x14f   : > { %p820_p7 = scmp.ne.s32.totalorder %s1072_s10, %s819_s27  ;;  %p824_p9 = scmp.lt.s32.totalorder %s1072_s10, %s1125_s3 }
 0x150   : > { %p825_p11 = scmp.lt.s32.totalorder %s823_s22, %s819_s27 }
 0x151   : > { %p821_p6 = pnand %p820_p7, %p1008_p13 }
 0x152   : > { %p826_p10 = por %p825_p11, %p824_p9 }
 0x153   : > { %p822_p4 = pneg %p821_p6 }
 0x155   : > { %p827_p1 = pnand %p826_p10, %p822_p4 }
 0x157   : > { %830 = shalt.err (!%p827_p1)
}
 0x158   : > { %s899_s4 = smov 128   ;;  %s900_s21 = smov 8  }
 0x159   : > { %645 = dma.vmem_to_hbm [thread:$0]  (%p1008_p13), %s1074_s5, 512, %s1072_s10, %s456_s15, %s899_s4, %s899_s4, %s900_s21  }
 0x15a PF: > { %s485_s6 = sand.u32 1, %s869_s12   ;;  %p1137_p8 = scmp.ne.s32.totalorder %s1130_s23, 0 }
 0x15b   : > { %p1138_p12 = scmp.ge.s32.totalorder %s889_s17, 2  ;;  %s486_s7 = scalar_lea.sflag [#allocation4], %s485_s6 }
 0x15d   : > { %p656_p0 = pnand %p1138_p12, %p1137_p8 }
 0x15f   : > { %p657_p2 = pneg %p656_p0 }
 0x161   : > { %864 = dma.done.wait (%p657_p2), %s486_s7, 512  }
 0x162   : > { %866 = vsyncadd (%p657_p2), %s486_s7, 4294966784  ;;  %s20_s17 = sadd.s32 1, %s889_s17   ;;  %s1139_s12 = smov %s873_s13 }
 0x163   : > { %p17_p3 = scmp.ge.s32.totalorder %s20_s17, 4   ;;  %s1140_s13 = smov %s877_s14 }
 0x164   : > { %s1141_s14 = smov %s1017_s19  ;;  %s1142_s15 = smov %s885_s16 }
 0x165   : > { %s1143_s16 = smov %s1145_s28  ;;  %19 = sbr.rel (!%p17_p3) target bundleno = 7 (0x7), region = 85 }
 0x16a   :  { %491 = vsyncpa [#allocation3], 1 }
 0x16b   :  { %493 = vsyncpa [#allocation3 + $0x1], 1 }
 0x16c   :  { %494 = vsyncpa [#allocation6], 1 }
 0x16d   :  { %495 = vsyncpa [#allocation4], 1 }
 0x16e   :  { %497 = vsyncpa [#allocation4 + $0x1], 1 }

</bundles_post_ra>
